<compile_context>
chip_gen: v6e
topology: v6e:2x2x1
jax: 0.10.0
libtpu: 0.0.40
codegen_flags: <defaults>
</compile_context>

<pallas_src>
import jax
import jax.numpy as jnp
from jax.experimental import pallas as pl
from jax.experimental.pallas import tpu as pltpu

IGNORE_INDEX = -100


# --------------------------------------------------------------------------
# Generation-aware tile / VMEM selection
# --------------------------------------------------------------------------
def _tpu_defaults():
    """Per-generation (TN, TV, vmem_limit) preferences."""
    kind = ""
    try:
        kind = jax.devices()[0].device_kind.lower()
    except Exception:
        pass
    if "v5 lite" in kind or "v5e" in kind or "v5litepod" in kind:
        # v5e: crossover ~240 FLOP/B, 128 MiB VMEM -> big tiles are cheap.
        return 512, 1024, 100 * 1024 * 1024
    if "v6" in kind or "trillium" in kind:
        # v6e: crossover ~680 FLOP/B -> TN must be large to be MXU-bound.
        return 1024, 1024, 100 * 1024 * 1024
    if "v7" in kind or "tpu7" in kind:
        # v7x: crossover ~310 FLOP/B, only 64 MiB VMEM -> moderate tiles.
        return 512, 512, 44 * 1024 * 1024
    # Unknown backend (e.g. interpret mode): conservative.
    return 512, 512, 40 * 1024 * 1024


def _largest_divisor_at_most(n, cap):
    cap = max(1, min(int(cap), int(n)))
    for d in range(cap, 0, -1):
        if n % d == 0:
            return d
    return 1


def _vmem_estimate_bytes(tn, tv, h, in_bytes=2):
    x_tiles = 2 * h * tn * in_bytes          # double-buffered (H, TN) bf16
    w_tiles = 2 * tv * h * in_bytes          # double-buffered (TV, H) bf16
    logits = 3 * tv * tn * 4                 # f32 logits + elementwise temps
    misc = 8 * tn * 8                        # scratches, labels, loss (tiny)
    return x_tiles + w_tiles + logits + misc


def _select_tiles(bt, v, h, tn_pref, tv_pref, vmem_limit):
    tn = _largest_divisor_at_most(bt, tn_pref)
    tv = _largest_divisor_at_most(v, tv_pref)
    usable = int(vmem_limit * 0.85)          # headroom for compiler scratch/spills
    for _ in range(64):
        if _vmem_estimate_bytes(tn, tv, h) <= usable:
            break
        new_tn, new_tv = tn, tv
        if tv >= tn and tv > 8:
            new_tv = _largest_divisor_at_most(v, tv // 2)
        elif tn > 8:
            new_tn = _largest_divisor_at_most(bt, tn // 2)
        if (new_tn, new_tv) == (tn, tv):
            break                            # cannot shrink further
        tn, tv = new_tn, new_tv
    return tn, tv


# --------------------------------------------------------------------------
# Kernel
# --------------------------------------------------------------------------
def _flce_kernel(xt_ref, w_ref, y_ref, loss_ref, m_sc, l_sc, t_sc):
    j = pl.program_id(1)

    @pl.when(j == 0)
    def _():
        m_sc[...] = jnp.full_like(m_sc, -jnp.inf)
        l_sc[...] = jnp.zeros_like(l_sc)
        t_sc[...] = jnp.zeros_like(t_sc)

    # Plain [TV, H] x [H, TN] MXU matmul (x is pre-transposed in the wrapper,
    # so no per-step XLU transpose of the resident x tile).  bf16 operands,
    # f32 accumulation.
    logits = jax.lax.dot_general(
        w_ref[...],
        xt_ref[...],
        dimension_numbers=(((1,), (0,)), ((), ())),
        preferred_element_type=jnp.float32,
    )
    tv, tn = logits.shape

    row_ids = jax.lax.broadcasted_iota(jnp.int32, (tv, tn), 0) + j * tv
    y = y_ref[0]                       # (1, TN) int32 labels for this token tile
    is_target = row_ids == y           # broadcast over the vocab (sublane) axis

    # Target logit: exactly one hit per valid token across all vocab tiles
    # (labels are in [0, V) or ignore_index; ignored tokens never match and
    # are masked out in the epilogue anyway).
    t_sc[...] += jnp.sum(jnp.where(is_target, logits, 0.0), axis=0, keepdims=True)

    # Online logsumexp over the vocab axis (f32 throughout, exp on the EUP).
    m_new = jnp.maximum(m_sc[...], jnp.max(logits, axis=0, keepdims=True))
    l_sc[...] = l_sc[...] * jnp.exp(m_sc[...] - m_new) + jnp.sum(
        jnp.exp(logits - m_new), axis=0, keepdims=True
    )
    m_sc[...] = m_new

    @pl.when(j == pl.num_programs(1) - 1)
    def _():
        lse = m_sc[...] + jnp.log(l_sc[...])
        per_tok = lse - t_sc[...]                      # -log softmax(logits)[y]
        valid = y != IGNORE_INDEX
        loss_ref[0] = jnp.where(valid, per_tok, 0.0)   # lane-dense (1, TN) store


# --------------------------------------------------------------------------
# Wrapper
# --------------------------------------------------------------------------
def fused_linear_cross_entropy(x, w, y, *, tn=None, tv=None,
                               compute_dtype=jnp.bfloat16):
    """x: (BT, H), w: (V, H), y: (BT,) int32 in [0, V) or ignore_index (-100).

    Returns the scalar mean CE loss over non-ignored tokens.  Pass bf16
    weights to avoid an extra HBM cast pass over W on every call.
    """
    bt, h = x.shape
    v, h2 = w.shape
    assert h == h2, (x.shape, w.shape)

    tn_pref, tv_pref, vmem_limit = _tpu_defaults()
    if tn is None:
        tn = tn_pref
    if tv is None:
        tv = tv_pref
    tn, tv = _select_tiles(bt, v, h, tn, tv, vmem_limit)
    assert bt % tn == 0 and v % tv == 0

    # bf16 operands in HBM; W is only cast if it is not already bf16 (cast is
    # elided by XLA when dtypes match).  x is small vs W, so transposing it to
    # (H, BT) in the wrapper is cheap and removes any in-kernel transpose.
    xt = jnp.transpose(x.astype(compute_dtype))        # (H, BT)
    wc = w if w.dtype == compute_dtype else w.astype(compute_dtype)
    y3 = y.reshape(bt // tn, 1, tn).astype(jnp.int32)

    per_token = pl.pallas_call(
        _flce_kernel,
        out_shape=jax.ShapeDtypeStruct((bt // tn, 1, tn), jnp.float32),
        grid_spec=pltpu.PrefetchScalarGridSpec(
            num_scalar_prefetch=0,
            grid=(bt // tn, v // tv),
            in_specs=[
                pl.BlockSpec((h, tn), lambda i, j: (0, i)),   # x^T tile (resident over j)
                pl.BlockSpec((tv, h), lambda i, j: (j, 0)),   # W tile (streamed over j)
                pl.BlockSpec((1, 1, tn), lambda i, j: (i, 0, 0)),
            ],
            out_specs=pl.BlockSpec((1, 1, tn), lambda i, j: (i, 0, 0)),
            scratch_shapes=[
                pltpu.VMEM((1, tn), jnp.float32),  # running max
                pltpu.VMEM((1, tn), jnp.float32),  # running sum-exp
                pltpu.VMEM((1, tn), jnp.float32),  # target logit
            ],
        ),
        compiler_params=pltpu.CompilerParams(
            dimension_semantics=("parallel", "arbitrary"),
            vmem_limit_bytes=vmem_limit,
        ),
    )(xt, wc, y3)

    # Tiny glue: masked mean over non-ignored tokens (per_token is BT floats).
    n_valid = jnp.maximum(jnp.sum((y != IGNORE_INDEX).astype(jnp.float32)), 1.0)
    return jnp.sum(per_token) / n_valid


# --------------------------------------------------------------------------
# Reference + self-test
# --------------------------------------------------------------------------
def _reference(x, w, y):
    logits = x @ w.T
    lse = jax.nn.logsumexp(logits, axis=-1)
    tgt = jnp.take_along_axis(
        logits, jnp.clip(y, 0, w.shape[0] - 1)[:, None], axis=-1
    )[:, 0]
    per = lse - tgt
    valid = y != IGNORE_INDEX
    return jnp.sum(jnp.where(valid, per, 0.0)) / jnp.maximum(
        jnp.sum(valid.astype(jnp.float32)), 1.0
    )


if __name__ == "__main__":
    # Small shapes: batch=2, seq=8 -> BT=16 tokens, hidden H=32, vocab V=256.
    BT, H, V = 16, 32, 256

    key = jax.random.PRNGKey(0)
    kx, kw, ky = jax.random.split(key, 3)
    x = jax.random.normal(kx, (BT, H), dtype=jnp.float32)
    # Deterministic "Linear" weight init (no checkpoint load).
    w = jax.random.normal(kw, (V, H), dtype=jnp.float32) * (1.0 / jnp.sqrt(H))
    y = jax.random.randint(ky, (BT,), 0, V, dtype=jnp.int32)
    # Mark a couple of tokens as ignored (ignore_index=-100 path).
    y = y.at[0].set(IGNORE_INDEX).at[7].set(IGNORE_INDEX)

    loss = jax.jit(fused_linear_cross_entropy)(x, w, y)
    jax.block_until_ready(loss)

    # Reference at the kernel's compute precision (bf16 operands, f32 math).
    xr = x.astype(jnp.bfloat16).astype(jnp.float32)
    wr = w.astype(jnp.bfloat16).astype(jnp.float32)
    ref = _reference(xr, wr, y)
    assert jnp.allclose(loss, ref, atol=2e-3, rtol=2e-3), (loss, ref)
    print("KERNEL_OK")
</pallas_src>

<mosaic_0001>
module attributes {stable_mosaic.version = 11 : i64} {
  func.func @_flce_kernel(%arg0: i32, %arg1: i32, %arg2: memref<32x16xbf16, #tpu.memory_space<vmem>>, %arg3: memref<256x32xbf16, #tpu.memory_space<vmem>>, %arg4: memref<1x1x16xi32, #tpu.memory_space<vmem>>, %arg5: memref<1x1x16xf32, #tpu.memory_space<vmem>>, %arg6: memref<1x16xf32, #tpu.memory_space<vmem>>, %arg7: memref<1x16xf32, #tpu.memory_space<vmem>>, %arg8: memref<1x16xf32, #tpu.memory_space<vmem>>) attributes {dimension_semantics = [#tpu.dimension_semantics<parallel>, #tpu.dimension_semantics<arbitrary>], iteration_bounds = array<i64: 1, 1>, scalar_prefetch = 0 : i64, scratch_operands = 3 : i64, tpu.core_type = #tpu.core_type<tc>, window_params = [{transform_indices = @transform_0, window_bounds = array<i64: 32, 16>}, {transform_indices = @transform_1, window_bounds = array<i64: 256, 32>}, {transform_indices = @transform_2, window_bounds = array<i64: 1, 1, 16>}, {transform_indices = @transform_3, window_bounds = array<i64: 1, 1, 16>}]} {
    %c0_i32 = arith.constant 0 : i32
    %0 = arith.cmpi eq, %arg1, %c0_i32 : i32
    %1 = arith.extui %0 : i1 to i32
    %c0_i32_0 = arith.constant 0 : i32
    %2 = arith.cmpi ne, %1, %c0_i32_0 : i32
    scf.if %2 {
      %cst_27 = arith.constant 0xFF800000 : f32
      %41 = vector.broadcast %cst_27 : f32 to vector<1x16xf32>
      %c0_28 = arith.constant 0 : index
      %c0_29 = arith.constant 0 : index
      %42 = vector.load %arg6[%c0_28, %c0_29] : memref<1x16xf32, #tpu.memory_space<vmem>>, vector<1x16xf32>
      tpu.vector_store %arg6[%c0_28, %c0_29], %41 {strides = array<i32>} : memref<1x16xf32, #tpu.memory_space<vmem>>, vector<1x16xf32>,
      %cst_30 = arith.constant 0.000000e+00 : f32
      %43 = vector.broadcast %cst_30 : f32 to vector<1x16xf32>
      %c0_31 = arith.constant 0 : index
      %c0_32 = arith.constant 0 : index
      %44 = vector.load %arg7[%c0_31, %c0_32] : memref<1x16xf32, #tpu.memory_space<vmem>>, vector<1x16xf32>
      tpu.vector_store %arg7[%c0_31, %c0_32], %43 {strides = array<i32>} : memref<1x16xf32, #tpu.memory_space<vmem>>, vector<1x16xf32>,
      %cst_33 = arith.constant 0.000000e+00 : f32
      %45 = vector.broadcast %cst_33 : f32 to vector<1x16xf32>
      %c0_34 = arith.constant 0 : index
      %c0_35 = arith.constant 0 : index
      %46 = vector.load %arg8[%c0_34, %c0_35] : memref<1x16xf32, #tpu.memory_space<vmem>>, vector<1x16xf32>
      tpu.vector_store %arg8[%c0_34, %c0_35], %45 {strides = array<i32>} : memref<1x16xf32, #tpu.memory_space<vmem>>, vector<1x16xf32>,
    } else {
    }
    %c0 = arith.constant 0 : index
    %c0_1 = arith.constant 0 : index
    %3 = vector.load %arg3[%c0, %c0_1] : memref<256x32xbf16, #tpu.memory_space<vmem>>, vector<256x32xbf16>
    %c0_2 = arith.constant 0 : index
    %c0_3 = arith.constant 0 : index
    %4 = vector.load %arg2[%c0_2, %c0_3] : memref<32x16xbf16, #tpu.memory_space<vmem>>, vector<32x16xbf16>
    %cst = arith.constant dense<0.000000e+00> : vector<256x16xf32>
    %5 = tpu.matmul %3, %4, %cst {dimension_numbers = #tpu.dot_dimension_numbers<[1], [0], [0], [1], [0, 0, 1, 1], [], []>} : vector<256x32xbf16>, vector<32x16xbf16>, vector<256x16xf32> -> vector<256x16xf32>
    %6 = tpu.iota {dimensions = array<i32: 0>} : vector<256x16xi32>
    %c256_i32 = arith.constant 256 : i32
    %7 = arith.muli %arg1, %c256_i32 : i32
    %8 = vector.broadcast %7 : i32 to vector<256x16xi32>
    %9 = arith.addi %6, %8 : vector<256x16xi32>
    %c0_4 = arith.constant 0 : index
    %c0_5 = arith.constant 0 : index
    %c0_6 = arith.constant 0 : index
    %10 = vector.load %arg4[%c0_4, %c0_5, %c0_6] : memref<1x1x16xi32, #tpu.memory_space<vmem>>, vector<1x1x16xi32>
    %11 = vector.shape_cast %10 : vector<1x1x16xi32> to vector<1x16xi32>
    %12 = vector.broadcast %11 : vector<1x16xi32> to vector<256x16xi32>
    %13 = arith.cmpi eq, %9, %12 : vector<256x16xi32>
    %c0_7 = arith.constant 0 : index
    %c0_8 = arith.constant 0 : index
    %14 = vector.load %arg8[%c0_7, %c0_8] : memref<1x16xf32, #tpu.memory_space<vmem>>, vector<1x16xf32>
    %cst_9 = arith.constant 0.000000e+00 : f32
    %15 = vector.broadcast %cst_9 : f32 to vector<256x16xf32>
    %16 = arith.select %13, %5, %15 : vector<256x16xi1>, vector<256x16xf32>
    %cst_10 = arith.constant dense<0.000000e+00> : vector<16xf32>
    %17 = vector.multi_reduction <add>, %16, %cst_10 [0] : vector<256x16xf32> to vector<16xf32>
    %18 = vector.shape_cast %17 : vector<16xf32> to vector<1x16xf32>
    %19 = arith.addf %14, %18 : vector<1x16xf32>
    %c0_11 = arith.constant 0 : index
    %c0_12 = arith.constant 0 : index
    %20 = vector.load %arg8[%c0_11, %c0_12] : memref<1x16xf32, #tpu.memory_space<vmem>>, vector<1x16xf32>
    tpu.vector_store %arg8[%c0_11, %c0_12], %19 {strides = array<i32>} : memref<1x16xf32, #tpu.memory_space<vmem>>, vector<1x16xf32>,
    %c0_13 = arith.constant 0 : index
    %c0_14 = arith.constant 0 : index
    %21 = vector.load %arg6[%c0_13, %c0_14] : memref<1x16xf32, #tpu.memory_space<vmem>>, vector<1x16xf32>
    %cst_15 = arith.constant dense<0xFF800000> : vector<16xf32>
    %22 = vector.multi_reduction <maximumf>, %5, %cst_15 [0] : vector<256x16xf32> to vector<16xf32>
    %23 = vector.shape_cast %22 : vector<16xf32> to vector<1x16xf32>
    %24 = arith.maximumf %21, %23 : vector<1x16xf32>
    %c0_16 = arith.constant 0 : index
    %c0_17 = arith.constant 0 : index
    %25 = vector.load %arg7[%c0_16, %c0_17] : memref<1x16xf32, #tpu.memory_space<vmem>>, vector<1x16xf32>
    %c0_18 = arith.constant 0 : index
    %c0_19 = arith.constant 0 : index
    %26 = vector.load %arg6[%c0_18, %c0_19] : memref<1x16xf32, #tpu.memory_space<vmem>>, vector<1x16xf32>
    %27 = arith.subf %26, %24 : vector<1x16xf32>
    %28 = math.exp %27 : vector<1x16xf32>
    %29 = arith.mulf %25, %28 : vector<1x16xf32>
    %30 = vector.broadcast %24 : vector<1x16xf32> to vector<256x16xf32>
    %31 = arith.subf %5, %30 : vector<256x16xf32>
    %32 = math.exp %31 : vector<256x16xf32>
    %cst_20 = arith.constant dense<0.000000e+00> : vector<16xf32>
    %33 = vector.multi_reduction <add>, %32, %cst_20 [0] : vector<256x16xf32> to vector<16xf32>
    %34 = vector.shape_cast %33 : vector<16xf32> to vector<1x16xf32>
    %35 = arith.addf %29, %34 : vector<1x16xf32>
    %c0_21 = arith.constant 0 : index
    %c0_22 = arith.constant 0 : index
    %36 = vector.load %arg7[%c0_21, %c0_22] : memref<1x16xf32, #tpu.memory_space<vmem>>, vector<1x16xf32>
    tpu.vector_store %arg7[%c0_21, %c0_22], %35 {strides = array<i32>} : memref<1x16xf32, #tpu.memory_space<vmem>>, vector<1x16xf32>,
    %c0_23 = arith.constant 0 : index
    %c0_24 = arith.constant 0 : index
    %37 = vector.load %arg6[%c0_23, %c0_24] : memref<1x16xf32, #tpu.memory_space<vmem>>, vector<1x16xf32>
    tpu.vector_store %arg6[%c0_23, %c0_24], %24 {strides = array<i32>} : memref<1x16xf32, #tpu.memory_space<vmem>>, vector<1x16xf32>,
    %c0_i32_25 = arith.constant 0 : i32
    %38 = arith.cmpi eq, %arg1, %c0_i32_25 : i32
    %39 = arith.extui %38 : i1 to i32
    %c0_i32_26 = arith.constant 0 : i32
    %40 = arith.cmpi ne, %39, %c0_i32_26 : i32
    scf.if %40 {
      %c0_27 = arith.constant 0 : index
      %c0_28 = arith.constant 0 : index
      %41 = vector.load %arg6[%c0_27, %c0_28] : memref<1x16xf32, #tpu.memory_space<vmem>>, vector<1x16xf32>
      %c0_29 = arith.constant 0 : index
      %c0_30 = arith.constant 0 : index
      %42 = vector.load %arg7[%c0_29, %c0_30] : memref<1x16xf32, #tpu.memory_space<vmem>>, vector<1x16xf32>
      %43 = math.log %42 : vector<1x16xf32>
      %44 = arith.addf %41, %43 : vector<1x16xf32>
      %c0_31 = arith.constant 0 : index
      %c0_32 = arith.constant 0 : index
      %45 = vector.load %arg8[%c0_31, %c0_32] : memref<1x16xf32, #tpu.memory_space<vmem>>, vector<1x16xf32>
      %46 = arith.subf %44, %45 : vector<1x16xf32>
      %c-100_i32 = arith.constant -100 : i32
      %47 = vector.broadcast %c-100_i32 : i32 to vector<1x16xi32>
      %48 = arith.cmpi ne, %11, %47 : vector<1x16xi32>
      %cst_33 = arith.constant 0.000000e+00 : f32
      %49 = vector.broadcast %cst_33 : f32 to vector<1x16xf32>
      %50 = arith.select %48, %46, %49 : vector<1x16xi1>, vector<1x16xf32>
      %c0_34 = arith.constant 0 : index
      %c0_35 = arith.constant 0 : index
      %c0_36 = arith.constant 0 : index
      %51 = vector.load %arg5[%c0_34, %c0_35, %c0_36] : memref<1x1x16xf32, #tpu.memory_space<vmem>>, vector<1x1x16xf32>
      %52 = vector.shape_cast %51 : vector<1x1x16xf32> to vector<1x16xf32>
      %53 = vector.shape_cast %50 : vector<1x16xf32> to vector<1x1x16xf32>
      tpu.vector_store %arg5[%c0_34, %c0_35, %c0_36], %53 {strides = array<i32>} : memref<1x1x16xf32, #tpu.memory_space<vmem>>, vector<1x1x16xf32>,
    } else {
    }
    return
  }
  func.func @transform_0(%arg0: i32, %arg1: i32) -> (i32, i32) {
    %c0_i32 = arith.constant 0 : i32
    %c0_i32_0 = arith.constant 0 : i32
    return %c0_i32, %arg0 : i32, i32
  }
  func.func @transform_1(%arg0: i32, %arg1: i32) -> (i32, i32) {
    %c0_i32 = arith.constant 0 : i32
    %c0_i32_0 = arith.constant 0 : i32
    return %arg1, %c0_i32 : i32, i32
  }
  func.func @transform_2(%arg0: i32, %arg1: i32) -> (i32, i32, i32) {
    %c0_i32 = arith.constant 0 : i32
    %c0_i32_0 = arith.constant 0 : i32
    %c0_i32_1 = arith.constant 0 : i32
    return %arg0, %c0_i32, %c0_i32_0 : i32, i32, i32
  }
  func.func @transform_3(%arg0: i32, %arg1: i32) -> (i32, i32, i32) {
    %c0_i32 = arith.constant 0 : i32
    %c0_i32_0 = arith.constant 0 : i32
    %c0_i32_1 = arith.constant 0 : i32
    return %arg0, %c0_i32, %c0_i32_0 : i32, i32, i32
  }
}

</mosaic_0001>

<bundles_post_ra>
// kernel: fused_linear_cross_entropy.1
= control target key start
LH: loop header
LB: loop body
LE: loop exit
PB: predicated region body
PF: predicated region fallthrough
CT: control target
= control target key end

     0   :  { %vm151_vm0 = vcmask 261120   ;;  %vm19_vm1 = vcmask 122880   ;;  %v1018_v18 = vmov -inf   ;;  %v1019_v19 = vmov 0.0   ;;  %s1555_s0 = inlined_call_operand.vmem [shape: bf16[32,16], index: 0, kind: input, shape index: {}]   ;;  %s1556_s1 = inlined_call_operand.vmem [shape: bf16[256,32], index: 1, kind: input, shape index: {}]   ;;  %s1557_s2 = inlined_call_operand.vmem [shape: s32[1,1,16], index: 2, kind: input, shape index: {}]   ;;  %s1558_s3 = inlined_call_operand.vmem [shape: f32[1,1,16], index: 3, kind: output, shape index: {}]  }
   0x1   :  { %v932_v0 = vld [vmem:[%s1555_s0 + $0x8] sm:$0xff]   ;;  %v933_v1 = vld [vmem:[%s1555_s0] sm:$0xff]   ;;  %v938_v6 = vld [vmem:[%s1556_s1 + $0x10] sm:$0xff]   ;;  %20 = vst.msk [vmem:[#allocation2] sm:$0x1] %vm19_vm1, %v1018_v18  ;;  %v361_v20 = vlaneseq  ;;  %vm498_vm2 = vcmask 130048  }
   0x2   :  { %890 = vmatprep.subr.bf16.mxu0 %v932_v0  ;;  %926 = vmatprep.subr.bf16.mxu1 %v932_v0  ;;  %v934_v2 = vld [vmem:[%s1556_s1] sm:$0xff]   ;;  %v935_v4 = vld [vmem:[%s1556_s1 + $0x8] sm:$0xff]   ;;  %v940_v7 = vld [vmem:[%s1556_s1 + $0x50] sm:$0xff]   ;;  %21 = vst.msk [vmem:[#allocation3] sm:$0x1] %vm19_vm1, %v1019_v19 }
   0x3   :  { %891 = vmatpush3.bf16.msra.mxu0 %v932_v0  ;;  %928 = vmatpush3.bf16.msra.mxu1 %v932_v0  ;;  %v936_v3 = vld [vmem:[%s1556_s1 + $0x40] sm:$0xff]   ;;  %v937_v5 = vld [vmem:[%s1556_s1 + $0x48] sm:$0xff]   ;;  %v939_v8 = vld [vmem:[%s1556_s1 + $0x18] sm:$0xff]   ;;  %22 = vst.msk [vmem:[#allocation4] sm:$0x1] %vm19_vm1, %v1019_v19  ;;  %v1113_v21 = vshrl.u32 %v361_v20, 7 }
   0x4   :  { %892 = vmatprep.subr.bf16.mxu0 %v933_v1  ;;  %927 = vmatprep.subr.bf16.mxu1 %v933_v1  ;;  %v941_v9 = vld [vmem:[%s1556_s1 + $0x58] sm:$0xff]   ;;  %v942_v10 = vld [vmem:[%s1556_s1 + $0x20] sm:$0xff]   ;;  %v943_v12 = vld [vmem:[%s1556_s1 + $0x28] sm:$0xff]  }
   0x5   :  { %894 = vmatprep.mubr.msk.bf16.mxu0 %vm151_vm0, %v934_v2  ;;  %910 = vmatprep.mubr.msk.bf16.mxu1 %vm151_vm0, %v936_v3  ;;  %v944_v11 = vld [vmem:[%s1556_s1 + $0x60] sm:$0xff]   ;;  %v945_v13 = vld [vmem:[%s1556_s1 + $0x68] sm:$0xff]   ;;  %v946_v14 = vld [vmem:[%s1556_s1 + $0x30] sm:$0xff]   ;;  %v431_v22 = vsub.s32 0, %v1113_v21  ;;  %v364_v25 = vadd.s32 16, %v1113_v21  ;;  %v363_v28 = vadd.s32 8, %v1113_v21 }
   0x6   :  { %v948_v15 = vld [vmem:[%s1556_s1 + $0x70] sm:$0xff]   ;;  %v947_v16 = vld [vmem:[%s1556_s1 + $0x38] sm:$0xff]   ;;  %v1119_v23 = vld [vmem:[%s1557_s2] sm:$0x1]  ;;  %v365_v31 = vadd.s32 24, %v1113_v21  ;;  %v366_v34 = vadd.s32 32, %v1113_v21 }
   0x7   :  { %893 = vmatpush3.bf16.msra.mxu0 %v933_v1  ;;  %929 = vmatpush3.bf16.msra.mxu1 %v933_v1  ;;  %v949_v17 = vld [vmem:[%s1556_s1 + $0x78] sm:$0xff]   ;;  %v1127_v26 = vrot.slane %v1119_v23, %v431_v22  ;;  %v368_v42 = vadd.s32 48, %v1113_v21  ;;  %v367_v52 = vadd.s32 40, %v1113_v21  ;;  %v1172_v53 = vadd.s32 144, %v1113_v21 }
   0x8   :  { %v369_v56 = vadd.s32 56, %v1113_v21  ;;  %v1180_v58 = vadd.s32 128, %v1113_v21  ;;  %v1189_v62 = vadd.s32 80, %v1113_v21  ;;  %v370_v2 = vadd.s32 64, %v1113_v21 }
   0x9   :  { %vm433_vm3 = vcmp.eq.s32.totalorder %v1113_v21, %v1127_v26  ;;  %vm435_vm4 = vcmp.eq.s32.totalorder %v364_v25, %v1127_v26  ;;  %vm434_vm5 = vcmp.eq.s32.totalorder %v363_v28, %v1127_v26  ;;  %vm436_vm6 = vcmp.eq.s32.totalorder %v365_v31, %v1127_v26 }
   0xa   :  { %895 = vmatmul.mubr.msk.bf16.vlgmr.msra.gmra.mxu0 %vm151_vm0, %v935_v4  ;;  %911 = vmatmul.mubr.msk.bf16.vlgmr.msra.gmra.mxu1 %vm151_vm0, %v937_v5  ;;  %vm437_vm7 = vcmp.eq.s32.totalorder %v366_v34, %v1127_v26  ;;  %vm439_vm8 = vcmp.eq.s32.totalorder %v368_v42, %v1127_v26  ;;  %vm438_vm9 = vcmp.eq.s32.totalorder %v367_v52, %v1127_v26  ;;  %v371_v28 = vadd.s32 72, %v1113_v21 }
   0xb   :  { %898 = vmatprep.mubr.msk.bf16.mxu0 %vm151_vm0, %v938_v6  ;;  %914 = vmatprep.mubr.msk.bf16.mxu1 %vm151_vm0, %v940_v7  ;;  %v1205_v7 = vadd.s32 152, %v1113_v21  ;;  %vm440_vm10 = vcmp.eq.s32.totalorder %v369_v56, %v1127_v26  ;;  %vm443_vm11 = vcmp.eq.s32.totalorder %v1189_v62, %v1127_v26  ;;  %vm441_vm12 = vcmp.eq.s32.totalorder %v370_v2, %v1127_v26 }
   0xc   :  { %v1244_v42 = vadd.s32 120, %v1113_v21  ;;  %vm442_vm14 = vcmp.eq.s32.totalorder %v371_v28, %v1127_v26 }
  0x12   :  { %899 = vmatmul.mubr.msk.bf16.gmra.mxu0 %vm151_vm0, %v939_v8  ;;  %915 = vmatmul.mubr.msk.bf16.gmra.mxu1 %vm151_vm0, %v941_v9  ;;  %v1208_v8 = vadd.s32 136, %v1113_v21 }
  0x13   :  { %902 = vmatprep.mubr.msk.bf16.mxu0 %vm151_vm0, %v942_v10  ;;  %918 = vmatprep.mubr.msk.bf16.mxu1 %vm151_vm0, %v944_v11 }
  0x1a   :  { %903 = vmatmul.mubr.msk.bf16.gmra.mxu0 %vm151_vm0, %v943_v12  ;;  %919 = vmatmul.mubr.msk.bf16.gmra.mxu1 %vm151_vm0, %v945_v13 }
  0x1b   :  { %906 = vmatprep.mubr.msk.bf16.mxu0 %vm151_vm0, %v946_v14  ;;  %922 = vmatprep.mubr.msk.bf16.mxu1 %vm151_vm0, %v948_v15  ;;  %v373_v14 = vadd.s32 88, %v1113_v21 }
  0x1d   :  { %vm444_vm13 = vcmp.eq.s32.totalorder %v373_v14, %v1127_v26 }
  0x22   :  { %907 = vmatmul.mubr.msk.bf16.gmra.mxu0 %vm151_vm0, %v947_v16  ;;  %923 = vmatmul.mubr.msk.bf16.gmra.mxu1 %vm151_vm0, %v949_v17 }
  0xca   :  { %v1121_v24 = vpop.f32.mrf.mxu0  ;;  %v1129_v27 = vpop.f32.mrf.mxu1 }
  0xcb   :  { %v604_v29 = vsel %vm498_vm2, %v1129_v27, -inf  ;;  %v468_v44 = vsel %vm435_vm4, %v1121_v24, 0.0 }
  0xcc   :  { %v1134_v30 = vpop.f32.mrf.mxu0  ;;  %v1139_v32 = vpop.f32.mrf.mxu1  ;;  %v502_v57 = vsel %vm498_vm2, %v468_v44, 0.0 }
  0xcd   :  { %v600_v33 = vsel %vm498_vm2, %v1139_v32, -inf  ;;  %v466_v38 = vsel %vm433_vm3, %v1134_v30, 0.0  ;;  %vm448_vm3 = vcmp.eq.s32.totalorder %v1244_v42, %v1127_v26 }
  0xce   :  { %v1145_v35 = vpop.f32.mrf.mxu0  ;;  %v605_v36 = vmax.f32 %v600_v33, %v604_v29  ;;  %v1148_v37 = vpop.f32.mrf.mxu1  ;;  %v499_v47 = vsel %vm498_vm2, %v466_v38, 0.0  ;;  %v1231_v29 = vadd.s32 112, %v1113_v21 }
  0xcf   :  { %v606_v39 = vsel %vm498_vm2, %v1148_v37, -inf  ;;  %v469_v54 = vsel %vm436_vm6, %v1145_v35, 0.0  ;;  %vm450_vm6 = vcmp.eq.s32.totalorder %v1208_v8, %v1127_v26 }
  0xd0   :  { %v1154_v40 = vpop.f32.mrf.mxu0  ;;  %v601_v41 = vmax.f32 %v606_v39, %v605_v36  ;;  %v1157_v43 = vpop.f32.mrf.mxu1  ;;  %v504_v3 = vsel %vm498_vm2, %v469_v54, 0.0  ;;  %v374_v36 = vadd.s32 96, %v1113_v21  ;;  %vm447_vm15 = vcmp.eq.s32.totalorder %v1231_v29, %v1127_v26 }
  0xd1   :  { %v467_v45 = vsel %vm434_vm5, %v1154_v40, 0.0  ;;  %v602_v46 = vsel %vm498_vm2, %v1157_v43, -inf  ;;  %vm449_vm5 = vcmp.eq.s32.totalorder %v1180_v58, %v1127_v26 }
  0xd2   :  { %v500_v48 = vsel %vm498_vm2, %v467_v45, 0.0  ;;  %v1166_v49 = vpop.f32.mrf.mxu0  ;;  %v613_v50 = vmax.f32 %v602_v46, %v601_v41  ;;  %v1168_v51 = vpop.f32.mrf.mxu1  ;;  %vm445_vm0 = vcmp.eq.s32.totalorder %v374_v36, %v1127_v26  ;;  %v482_v42 = vsel %vm449_vm5, %v1139_v32, 0.0 }
  0xd3   :  { %v501_v55 = vadd.f32 %v500_v48, %v499_v47  ;;  %v612_v60 = vsel %vm498_vm2, %v1168_v51, -inf  ;;  %v472_v15 = vsel %vm439_vm8, %v1166_v49, 0.0  ;;  %v1252_v48 = vadd.s32 104, %v1113_v21 }
  0xd4   :  { %v1182_v59 = vpop.f32.mrf.mxu0  ;;  %v1186_v61 = vpop.f32.mrf.mxu1  ;;  %v621_v1 = vmax.f32 %v613_v50, %v612_v60  ;;  %v510_v38 = vsel %vm498_vm2, %v472_v15, 0.0  ;;  %v573_v60 = vsel %vm498_vm2, %v1154_v40, -inf  ;;  %vm452_vm8 = vcmp.eq.s32.totalorder %v1205_v7, %v1127_v26 }
  0xd5   :  { %v503_v63 = vadd.f32 %v502_v57, %v501_v55  ;;  %v470_v0 = vsel %vm437_vm7, %v1182_v59, 0.0  ;;  %v608_v5 = vsel %vm498_vm2, %v1186_v61, -inf  ;;  %vm446_vm4 = vcmp.eq.s32.totalorder %v1252_v48, %v1127_v26 }
  0xd6   :  { %v1197_v4 = vpop.f32.mrf.mxu0  ;;  %v1202_v6 = vpop.f32.mrf.mxu1  ;;  %v506_v10 = vsel %vm498_vm2, %v470_v0, 0.0  ;;  %v629_v11 = vmax.f32 %v621_v1, %v608_v5  ;;  %vm451_vm7 = vcmp.eq.s32.totalorder %v1172_v53, %v1127_v26  ;;  %v383_v53 = vadd.s32 168, %v1113_v21 }
  0xd7   :  { %v505_v9 = vadd.f32 %v504_v3, %v503_v63  ;;  %v614_v19 = vsel %vm498_vm2, %v1202_v6, -inf  ;;  %v473_v31 = vsel %vm440_vm10, %v1197_v4, 0.0  ;;  %v580_v63 = vsel %vm498_vm2, %v1166_v49, -inf }
  0xd8   :  { %v1212_v12 = vpop.f32.mrf.mxu0  ;;  %v1216_v13 = vpop.f32.mrf.mxu1  ;;  %v607_v34 = vmax.f32 %v614_v19, %v629_v11  ;;  %v512_v50 = vsel %vm498_vm2, %v473_v31, 0.0  ;;  %v574_v3 = vsel %vm498_vm2, %v1121_v24, -inf  ;;  %v485_v7 = vsel %vm452_vm8, %v1148_v37, 0.0 }
  0xd9   :  { %v507_v16 = vadd.f32 %v506_v10, %v505_v9  ;;  %v471_v17 = vsel %vm438_vm9, %v1212_v12, 0.0  ;;  %v610_v39 = vsel %vm498_vm2, %v1216_v13, -inf  ;;  %v578_v52 = vsel %vm498_vm2, %v1212_v12, -inf }
  0xda   :  { %v508_v18 = vsel %vm498_vm2, %v471_v17, 0.0  ;;  %v1225_v20 = vpop.f32.mrf.mxu0  ;;  %v1227_v25 = vpop.f32.mrf.mxu1  ;;  %v609_v45 = vmax.f32 %v610_v39, %v607_v34  ;;  %v579_v5 = vmax.f32 %v573_v60, %v578_v52  ;;  %v576_v34 = vsel %vm498_vm2, %v1182_v59, -inf }
  0xdb   :  { %v509_v33 = vadd.f32 %v508_v18, %v507_v16  ;;  %v620_v54 = vsel %vm498_vm2, %v1227_v25, -inf  ;;  %v476_v10 = vsel %vm443_vm11, %v1225_v20, 0.0  ;;  %v588_v11 = vsel %vm498_vm2, %v1225_v20, -inf }
  0xdc   :  { %v1240_v41 = vpop.f32.mrf.mxu0  ;;  %v1249_v47 = vpop.f32.mrf.mxu1  ;;  %v617_v57 = vmax.f32 %v609_v45, %v620_v54  ;;  %v581_v18 = vmax.f32 %v574_v3, %v580_v63  ;;  %v572_v45 = vsel %vm498_vm2, %v1134_v30, -inf  ;;  %vm454_vm10 = vcmp.eq.s32.totalorder %v383_v53, %v1127_v26 }
  0xdd   :  { %v511_v44 = vadd.f32 %v510_v38, %v509_v33  ;;  %v474_v46 = vsel %vm441_vm12, %v1240_v41, 0.0  ;;  %v616_v1 = vsel %vm498_vm2, %v1249_v47, -inf  ;;  %v584_v54 = vsel %vm498_vm2, %v1240_v41, -inf }
  0xde   :  { %v1259_v55 = vpop.f32.mrf.mxu0  ;;  %v514_v0 = vsel %vm498_vm2, %v474_v46, 0.0  ;;  %v625_v19 = vmax.f32 %v617_v57, %v616_v1  ;;  %v1296_v33 = vpop.f32.mrf.mxu1  ;;  %v518_v46 = vsel %vm498_vm2, %v476_v10, 0.0  ;;  %v577_v63 = vmax.f32 %v572_v45, %v576_v34 }
  0xdf   :  { %v513_v56 = vadd.f32 %v512_v50, %v511_v44  ;;  %v477_v28 = vsel %vm444_vm13, %v1259_v55, 0.0  ;;  %v589_v50 = vmax.f32 %v581_v18, %v588_v11  ;;  %v622_v14 = vsel %vm498_vm2, %v1296_v33, -inf }
  0xe0   :  { %v1272_v2 = vpop.f32.mrf.mxu0  ;;  %v582_v10 = vsel %vm498_vm2, %v1197_v4, -inf  ;;  %v590_v18 = vsel %vm498_vm2, %v1259_v55, -inf }
  0xe1   :  { %v515_v9 = vadd.f32 %v514_v0, %v513_v56  ;;  %v475_v15 = vsel %vm442_vm14, %v1272_v2, 0.0  ;;  %v586_v16 = vsel %vm498_vm2, %v1272_v2, -inf  ;;  %v520_v0 = vsel %vm498_vm2, %v477_v28, 0.0 }
  0xe2   :  { %v1291_v17 = vpop.f32.mrf.mxu0  ;;  %v516_v62 = vsel %vm498_vm2, %v475_v15, 0.0  ;;  %v587_v31 = vmax.f32 %v579_v5, %v586_v16  ;;  %v1320_v5 = vpop.f32.mrf.mxu1  ;;  %v585_v16 = vmax.f32 %v577_v63, %v584_v54 }
  0xe3   :  { %v517_v38 = vadd.f32 %v516_v62, %v515_v9  ;;  %v596_v39 = vsel %vm498_vm2, %v1291_v17, -inf  ;;  %v575_v9 = vsel %vm498_vm2, %v1145_v35, -inf  ;;  %v480_v34 = vsel %vm447_vm15, %v1291_v17, 0.0 }
  0xe4   :  { %v1305_v44 = vpop.f32.mrf.mxu0  ;;  %v595_v52 = vmax.f32 %v587_v31, %v625_v19  ;;  %v597_v3 = vmax.f32 %v589_v50, %v596_v39  ;;  %v1333_v31 = vpop.f32.mrf.mxu1  ;;  %v618_v28 = vsel %vm498_vm2, %v1320_v5, -inf  ;;  %v583_v45 = vmax.f32 %v575_v9, %v582_v10 }
  0xe5   :  { %v519_v56 = vadd.f32 %v518_v46, %v517_v38  ;;  %v478_v57 = vsel %vm445_vm0, %v1305_v44, 0.0  ;;  %v592_v36 = vsel %vm498_vm2, %v1305_v44, -inf  ;;  %v628_v54 = vsel %vm498_vm2, %v1333_v31, -inf }
  0xe6   :  { %v1317_v60 = vpop.f32.mrf.mxu0  ;;  %v603_v1 = vmax.f32 %v595_v52, %v622_v14  ;;  %v522_v62 = vsel %vm498_vm2, %v478_v57, 0.0  ;;  %v593_v50 = vmax.f32 %v585_v16, %v592_v36  ;;  %v591_v48 = vmax.f32 %v583_v45, %v590_v18 }
  0xe7   :  { %v521_v11 = vadd.f32 %v520_v0, %v519_v56  ;;  %v481_v29 = vsel %vm448_vm3, %v1317_v60, 0.0  ;;  %v598_v56 = vsel %vm498_vm2, %v1317_v60, -inf  ;;  %v526_v57 = vsel %vm498_vm2, %v480_v34, 0.0  ;;  %v1357_v0 = vpop.f32.mrf.mxu1 }
  0xe8   :  { %v1328_v15 = vpop.f32.mrf.mxu0  ;;  %v615_v19 = vmax.f32 %v597_v3, %v603_v1  ;;  %v382_v3 = vadd.s32 160, %v1113_v21  ;;  %v528_v8 = vsel %vm498_vm2, %v481_v29, 0.0  ;;  %v599_v10 = vmax.f32 %v591_v48, %v598_v56 }
  0xe9   :  { %v523_v38 = vadd.f32 %v522_v62, %v521_v11  ;;  %v479_v39 = vsel %vm446_vm4, %v1328_v15, 0.0  ;;  %v483_v11 = vsel %vm450_vm6, %v1157_v43, 0.0  ;;  %v530_v16 = vsel %vm498_vm2, %v482_v42, 0.0  ;;  %v1372_v58 = vpop.f32.mrf.mxu1 }
  0xea   :  { %v623_v46 = vmax.f32 %v615_v19, %v618_v28  ;;  %v524_v52 = vsel %vm498_vm2, %v479_v39, 0.0  ;;  %v484_v19 = vsel %vm451_vm7, %v1129_v27, 0.0  ;;  %v624_v62 = vsel %vm498_vm2, %v1357_v0, -inf }
  0xeb   :  { %v525_v14 = vadd.f32 %v524_v52, %v523_v38  ;;  %v532_v28 = vsel %vm498_vm2, %v483_v11, 0.0  ;;  %v384_v38 = vadd.s32 176, %v1113_v21  ;;  %vm453_vm9 = vcmp.eq.s32.totalorder %v382_v3, %v1127_v26  ;;  %v1386_v29 = vpop.f32.mrf.mxu1 }
  0xec   :  { %v631_v63 = vmax.f32 %v623_v46, %v593_v50  ;;  %v594_v46 = vsel %vm498_vm2, %v1328_v15, -inf  ;;  %v534_v50 = vsel %vm498_vm2, %v484_v19, 0.0  ;;  %v385_v52 = vadd.s32 184, %v1113_v21 }
  0xed   :  { %v527_v1 = vadd.f32 %v526_v57, %v525_v14  ;;  %v486_v56 = vsel %vm453_vm9, %v1186_v61, 0.0  ;;  %v630_v48 = vsel %vm498_vm2, %v1372_v58, -inf  ;;  %v536_v57 = vsel %vm498_vm2, %v485_v7, 0.0 }
  0xee   :  { %v633_v9 = vmax.f32 %v628_v54, %v631_v63  ;;  %vm455_vm11 = vcmp.eq.s32.totalorder %v384_v38, %v1127_v26  ;;  %v386_v63 = vadd.s32 192, %v1113_v21  ;;  %vm456_vm12 = vcmp.eq.s32.totalorder %v385_v52, %v1127_v26 }
  0xef   :  { %v529_v36 = vadd.f32 %v528_v8, %v527_v1  ;;  %v487_v1 = vsel %vm454_vm10, %v1216_v13, 0.0  ;;  %v538_v8 = vsel %vm498_vm2, %v486_v56, 0.0  ;;  %v389_v38 = vadd.s32 216, %v1113_v21 }
  0xf0   :  { %v611_v18 = vmax.f32 %v599_v10, %v633_v9  ;;  %v626_v9 = vsel %vm498_vm2, %v1386_v29, -inf  ;;  %v387_v10 = vadd.s32 200, %v1113_v21  ;;  %v540_v53 = vsel %vm498_vm2, %v487_v1, 0.0 }
  0xf1   :  { %v531_v34 = vadd.f32 %v530_v16, %v529_v36  ;;  %v488_v36 = vsel %vm455_vm11, %v1168_v51, 0.0  ;;  %vm457_vm13 = vcmp.eq.s32.totalorder %v386_v63, %v1127_v26  ;;  %vm460_vm0 = vcmp.eq.s32.totalorder %v389_v38, %v1127_v26 }
  0xf2   :  { %v619_v39 = vmax.f32 %v611_v18, %v624_v62  ;;  %v388_v18 = vadd.s32 208, %v1113_v21  ;;  %v489_v62 = vsel %vm456_vm12, %v1202_v6, 0.0  ;;  %vm458_vm14 = vcmp.eq.s32.totalorder %v387_v10, %v1127_v26 }
  0xf3   :  { %v533_v45 = vadd.f32 %v532_v28, %v531_v34  ;;  %v542_v28 = vsel %vm498_vm2, %v488_v36, 0.0  ;;  %v490_v7 = vsel %vm457_vm13, %v1249_v47, 0.0 }
  0xf4   :  { %v627_v54 = vmax.f32 %v619_v39, %v594_v46  ;;  %v544_v46 = vsel %vm498_vm2, %v489_v62, 0.0  ;;  %vm459_vm15 = vcmp.eq.s32.totalorder %v388_v18, %v1127_v26 }
  0xf5   :  { %v535_v14 = vadd.f32 %v534_v50, %v533_v45  ;;  %v390_v50 = vadd.s32 224, %v1113_v21  ;;  %v492_v63 = vsel %vm459_vm15, %v1227_v25, 0.0 }
  0xf6   :  { %v632_v42 = vmax.f32 %v630_v48, %v627_v54  ;;  %v491_v54 = vsel %vm458_vm14, %v1320_v5, 0.0  ;;  %v391_v48 = vadd.s32 232, %v1113_v21  ;;  %v550_v36 = vsel %vm498_vm2, %v492_v63, 0.0 }
  0xf7   :  { %v537_v3 = vadd.f32 %v536_v57, %v535_v14  ;;  %v546_v14 = vsel %vm498_vm2, %v490_v7, 0.0  ;;  %v548_v1 = vsel %vm498_vm2, %v491_v54, 0.0  ;;  %vm461_vm3 = vcmp.eq.s32.totalorder %v390_v50, %v1127_v26 }
  0xf8   :  { %v634_v11 = vmax.f32 %v632_v42, %v626_v9  ;;  %vm462_vm4 = vcmp.eq.s32.totalorder %v391_v48, %v1127_v26  ;;  %v494_v18 = vsel %vm461_vm3, %v1357_v0, 0.0 }
  0xf9   :  { %v539_v16 = vadd.f32 %v538_v8, %v537_v3  ;;  %v392_v3 = vadd.s32 240, %v1113_v21  ;;  %v493_v8 = vsel %vm460_vm0, %v1296_v33, 0.0 }
  0xfa   :  { %v635_v19 = vrot.slane %v634_v11, 4  ;;  %v552_v62 = vsel %vm498_vm2, %v493_v8, 0.0 }
  0xfb   :  { %v541_v34 = vadd.f32 %v540_v53, %v539_v16  ;;  %v393_v16 = vadd.s32 248, %v1113_v21  ;;  %vm463_vm5 = vcmp.eq.s32.totalorder %v392_v3, %v1127_v26 }
  0xfc   :  { %v636_v39 = vmax.f32 %v634_v11, %v635_v19  ;;  %v1421_v11 = vld [vmem:[#allocation2] sm:$0x1] }
  0xfd   :  { %v543_v45 = vadd.f32 %v542_v28, %v541_v34  ;;  %v495_v28 = vsel %vm462_vm4, %v1386_v29, 0.0  ;;  %vm464_vm6 = vcmp.eq.s32.totalorder %v393_v16, %v1127_v26 }
  0xfe   :  { %v637_v52 = vrot.slane %v636_v39, 2  ;;  %v556_v50 = vsel %vm498_vm2, %v495_v28, 0.0 }
  0xff   :  { %v545_v56 = vadd.f32 %v544_v46, %v543_v45  ;;  %v496_v45 = vsel %vm463_vm5, %v1333_v31, 0.0 }
 0x100   :  { %v638_v57 = vmax.f32 %v636_v39, %v637_v52  ;;  %v554_v39 = vsel %vm498_vm2, %v494_v18, 0.0  ;;  %v497_v52 = vsel %vm464_vm6, %v1372_v58, 0.0  ;;  %v558_v26 = vsel %vm498_vm2, %v496_v45, 0.0 }
 0x101   :  { %v547_v42 = vadd.f32 %v546_v14, %v545_v56  ;;  %v560_v48 = vsel %vm498_vm2, %v497_v52, 0.0 }
 0x102   :  { %v639_v9 = vrot.slane %v638_v57, 1 }
 0x103   :  { %v549_v10 = vadd.f32 %v548_v1, %v547_v42 }
 0x104   :  { %v640_v53 = vmax.f32 %v638_v57, %v639_v9 }
 0x105   :  { %v551_v19 = vadd.f32 %v550_v36, %v549_v10 }
 0x106   :  { %v1430_v34 = vmax.f32 %v1421_v11, %v640_v53 }
 0x107   :  { %v553_v38 = vadd.f32 %v552_v62, %v551_v19  ;;  %v465_v62 = vld [vmem:[#allocation4] sm:$0x1] }
 0x108   :  { %v643_v7 = vsub.f32 %v1421_v11, %v1430_v34  ;;  %820 = vst.msk [vmem:[#allocation2] sm:$0x1] %vm19_vm1, %v1430_v34  ;;  %v1445_v56 = vrot.slane %v1430_v34, %v431_v22 }
 0x109   :  { %v555_v46 = vadd.f32 %v554_v39, %v553_v38 }
 0x10a   :  { %v653_v63 = vsub.f32 %v1134_v30, %v1445_v56  ;;  %v654_v42 = vsub.f32 %v1154_v40, %v1445_v56  ;;  %v655_v1 = vsub.f32 %v1121_v24, %v1445_v56  ;;  %v656_v21 = vsub.f32 %v1145_v35, %v1445_v56 }
 0x10b   :  { %v557_v54 = vadd.f32 %v556_v50, %v555_v46  ;;  %v657_v3 = vsub.f32 %v1182_v59, %v1445_v56  ;;  %v658_v10 = vsub.f32 %v1212_v12, %v1445_v56  ;;  %v659_v24 = vsub.f32 %v1166_v49, %v1445_v56 }
 0x10c   :  { %v685_v8 = vmul.f32 1.442695, %v653_v63  ;;  %v687_v36 = vmul.f32 1.442695, %v654_v42  ;;  %v689_v30 = vmul.f32 1.442695, %v655_v1  ;;  %v660_v59 = vsub.f32 %v1197_v4, %v1445_v56 }
 0x10d   :  { %v559_v14 = vadd.f32 %v558_v26, %v557_v54  ;;  %v691_v16 = vmul.f32 1.442695, %v656_v21  ;;  %v693_v40 = vmul.f32 1.442695, %v657_v3  ;;  %v695_v18 = vmul.f32 1.442695, %v658_v10 }
 0x10e   :  { %950 = vpow2.f32 %v685_v8  ;;  %v661_v12 = vsub.f32 %v1240_v41, %v1445_v56  ;;  %v697_v28 = vmul.f32 1.442695, %v659_v24  ;;  %v662_v49 = vsub.f32 %v1272_v2, %v1445_v56 }
 0x10f   :  { %v561_v57 = vadd.f32 %v560_v48, %v559_v14  ;;  %952 = vpow2.f32 %v687_v36  ;;  %v699_v39 = vmul.f32 1.442695, %v660_v59  ;;  %v663_v46 = vsub.f32 %v1225_v20, %v1445_v56 }
 0x110   :  { %954 = vpow2.f32 %v689_v30  ;;  %v701_v4 = vmul.f32 1.442695, %v661_v12  ;;  %v664_v50 = vsub.f32 %v1259_v55, %v1445_v56  ;;  %v703_v41 = vmul.f32 1.442695, %v662_v49 }
 0x111   :  { %v562_v22 = vrot.slane %v561_v57, 4  ;;  %956 = vpow2.f32 %v691_v16  ;;  %v665_v54 = vsub.f32 %v1305_v44, %v1445_v56  ;;  %v705_v2 = vmul.f32 1.442695, %v663_v46 }
 0x112   :  { %958 = vpow2.f32 %v693_v40  ;;  %v666_v20 = vsub.f32 %v1328_v15, %v1445_v56  ;;  %v667_v1 = vsub.f32 %v1291_v17, %v1445_v56  ;;  %v669_v30 = vsub.f32 %v1139_v32, %v1445_v56 }
 0x113   :  { %v563_v9 = vadd.f32 %v562_v22, %v561_v57  ;;  %960 = vpow2.f32 %v695_v18  ;;  %v707_v57 = vmul.f32 1.442695, %v664_v50  ;;  %v709_v44 = vmul.f32 1.442695, %v665_v54 }
 0x114   :  { %962 = vpow2.f32 %v697_v28  ;;  %v711_v15 = vmul.f32 1.442695, %v666_v20  ;;  %v713_v17 = vmul.f32 1.442695, %v667_v1  ;;  %v670_v40 = vsub.f32 %v1157_v43, %v1445_v56 }
 0x115   :  { %v564_v53 = vrot.slane %v563_v9, 2  ;;  %964 = vpow2.f32 %v699_v39  ;;  %v717_v32 = vmul.f32 1.442695, %v669_v30  ;;  %v673_v46 = vsub.f32 %v1186_v61, %v1445_v56 }
 0x116   :  { %966 = vpow2.f32 %v701_v4  ;;  %v719_v43 = vmul.f32 1.442695, %v670_v40 }
 0x117   :  { %v565_v35 = vadd.f32 %v564_v53, %v563_v9  ;;  %968 = vpow2.f32 %v703_v41  ;;  %v668_v9 = vsub.f32 %v1317_v60, %v1445_v56  ;;  %v725_v61 = vmul.f32 1.442695, %v673_v46 }
 0x118   :  { %970 = vpow2.f32 %v705_v2 }
 0x119   :  { %v566_v19 = vrot.slane %v565_v35, 1  ;;  %972 = vpow2.f32 %v707_v57  ;;  %v715_v60 = vmul.f32 1.442695, %v668_v9  ;;  %v678_v9 = vsub.f32 %v1320_v5, %v1445_v56 }
 0x11a   :  { %974 = vpow2.f32 %v709_v44  ;;  %v677_v44 = vsub.f32 %v1249_v47, %v1445_v56 }
 0x11b   :  { %v567_v38 = vadd.f32 %v566_v19, %v565_v35  ;;  %v951_v52 = vpop.eup %950  ;;  %976 = vpow2.f32 %v711_v15  ;;  %v671_v19 = vsub.f32 %v1129_v27, %v1445_v56  ;;  %v735_v5 = vmul.f32 1.442695, %v678_v9 }
 0x11c   :  { %v953_v26 = vpop.eup %952  ;;  %v749_v14 = vsel %vm498_vm2, %v951_v52, 0.0  ;;  %978 = vpow2.f32 %v713_v17  ;;  %v674_v52 = vsub.f32 %v1216_v13, %v1445_v56  ;;  %v733_v47 = vmul.f32 1.442695, %v677_v44 }
 0x11d   :  { %v568_v45 = vadd.f32 %v567_v38, %v465_v62  ;;  %v955_v48 = vpop.eup %954  ;;  %v750_v63 = vsel %vm498_vm2, %v953_v26, 0.0  ;;  %v672_v38 = vsub.f32 %v1148_v37, %v1445_v56  ;;  %980 = vpow2.f32 %v715_v60 }
 0x11e   :  { %v957_v55 = vpop.eup %956  ;;  %v751_v42 = vadd.f32 %v750_v63, %v749_v14  ;;  %v752_v21 = vsel %vm498_vm2, %v955_v48, 0.0  ;;  %982 = vpow2.f32 %v717_v32  ;;  %v721_v27 = vmul.f32 1.442695, %v671_v19 }
 0x11f   :  { %570 = vst.msk [vmem:[#allocation4] sm:$0x1] %vm19_vm1, %v568_v45  ;;  %v959_v22 = vpop.eup %958  ;;  %v754_v8 = vsel %vm498_vm2, %v957_v55, 0.0  ;;  %984 = vpow2.f32 %v719_v43  ;;  %v723_v37 = vmul.f32 1.442695, %v672_v38  ;;  %v675_v14 = vsub.f32 %v1168_v51, %v1445_v56 }
 0x120   :  { %v753_v3 = vadd.f32 %v752_v21, %v751_v42  ;;  %v961_v10 = vpop.eup %960  ;;  %v756_v16 = vsel %vm498_vm2, %v959_v22, 0.0  ;;  %986 = vpow2.f32 %v721_v27  ;;  %v676_v63 = vsub.f32 %v1202_v6, %v1445_v56 }
 0x121   :  { %v963_v53 = vpop.eup %962  ;;  %v758_v35 = vsel %vm498_vm2, %v961_v10, 0.0  ;;  %988 = vpow2.f32 %v723_v37  ;;  %v727_v13 = vmul.f32 1.442695, %v674_v52  ;;  %v729_v51 = vmul.f32 1.442695, %v675_v14 }
 0x122   :  { %v755_v36 = vadd.f32 %v754_v8, %v753_v3  ;;  %v965_v59 = vpop.eup %964  ;;  %v760_v62 = vsel %vm498_vm2, %v963_v53, 0.0  ;;  %990 = vpow2.f32 %v725_v61  ;;  %v731_v6 = vmul.f32 1.442695, %v676_v63 }
 0x123   :  { %v967_v12 = vpop.eup %966  ;;  %v762_v49 = vsel %vm498_vm2, %v965_v59, 0.0  ;;  %992 = vpow2.f32 %v727_v13  ;;  %v680_v53 = vsub.f32 %v1296_v33, %v1445_v56  ;;  %v682_v32 = vsub.f32 %v1386_v29, %v1445_v56 }
 0x124   :  { %v757_v24 = vadd.f32 %v756_v16, %v755_v36  ;;  %v969_v39 = vpop.eup %968  ;;  %v764_v4 = vsel %vm498_vm2, %v967_v12, 0.0  ;;  %v679_v36 = vsub.f32 %v1227_v25, %v1445_v56  ;;  %994 = vpow2.f32 %v729_v51 }
 0x125   :  { %v971_v50 = vpop.eup %970  ;;  %v766_v54 = vsel %vm498_vm2, %v969_v39, 0.0  ;;  %996 = vpow2.f32 %v731_v6  ;;  %v739_v33 = vmul.f32 1.442695, %v680_v53  ;;  %v683_v38 = vsub.f32 %v1333_v31, %v1445_v56 }
 0x126   :  { %v759_v18 = vadd.f32 %v758_v35, %v757_v24  ;;  %v973_v2 = vpop.eup %972  ;;  %v768_v48 = vsel %vm498_vm2, %v971_v50, 0.0  ;;  %v681_v35 = vsub.f32 %v1357_v0, %v1445_v56  ;;  %998 = vpow2.f32 %v733_v47 }
 0x127   :  { %v975_v20 = vpop.eup %974  ;;  %v770_v55 = vsel %vm498_vm2, %v973_v2, 0.0  ;;  %v737_v25 = vmul.f32 1.442695, %v679_v36  ;;  %1000 = vpow2.f32 %v735_v5  ;;  %v743_v29 = vmul.f32 1.442695, %v682_v32 }
 0x128   :  { %v761_v28 = vadd.f32 %v760_v62, %v759_v18  ;;  %v977_v42 = vpop.eup %976  ;;  %v772_v21 = vsel %vm498_vm2, %v975_v20, 0.0  ;;  %v741_v0 = vmul.f32 1.442695, %v681_v35  ;;  %v745_v50 = vmul.f32 1.442695, %v683_v38 }
 0x129   :  { %v979_v22 = vpop.eup %978  ;;  %v774_v15 = vsel %vm498_vm2, %v977_v42, 0.0  ;;  %1002 = vpow2.f32 %v737_v25  ;;  %v644_v9 = vmul.f32 1.442695, %v643_v7 }
 0x12a   :  { %v763_v45 = vadd.f32 %v762_v49, %v761_v28  ;;  %v981_v8 = vpop.eup %980  ;;  %v776_v30 = vsel %vm498_vm2, %v979_v22, 0.0  ;;  %1004 = vpow2.f32 %v739_v33 }
 0x12b   :  { %v983_v17 = vpop.eup %982  ;;  %v778_v24 = vsel %vm498_vm2, %v981_v8, 0.0  ;;  %1006 = vpow2.f32 %v741_v0 }
 0x12c   :  { %v765_v41 = vadd.f32 %v764_v4, %v763_v45  ;;  %v985_v40 = vpop.eup %984  ;;  %v780_v59 = vsel %vm498_vm2, %v983_v17, 0.0  ;;  %v684_v45 = vsub.f32 %v1372_v58, %v1445_v56  ;;  %1008 = vpow2.f32 %v743_v29 }
 0x12d   :  { %v987_v18 = vpop.eup %986  ;;  %v782_v62 = vsel %vm498_vm2, %v985_v40, 0.0  ;;  %1010 = vpow2.f32 %v745_v50 }
 0x12e   :  { %v767_v26 = vadd.f32 %v766_v54, %v765_v41  ;;  %v989_v12 = vpop.eup %988  ;;  %v784_v43 = vsel %vm498_vm2, %v987_v18, 0.0  ;;  %v747_v37 = vmul.f32 1.442695, %v684_v45 }
 0x12f   :  { %v991_v49 = vpop.eup %990  ;;  %v786_v46 = vsel %vm498_vm2, %v989_v12, 0.0 }
 0x130   :  { %v769_v57 = vadd.f32 %v768_v48, %v767_v26  ;;  %v993_v27 = vpop.eup %992  ;;  %v788_v41 = vsel %vm498_vm2, %v991_v49, 0.0  ;;  %1012 = vpow2.f32 %v747_v37 }
 0x131   :  { %v995_v31 = vpop.eup %994  ;;  %v790_v54 = vsel %vm498_vm2, %v993_v27, 0.0  ;;  %1014 = vpow2.f32 %v644_v9 }
 0x132   :  { %v771_v1 = vadd.f32 %v770_v55, %v769_v57  ;;  %v997_v2 = vpop.eup %996  ;;  %v792_v58 = vsel %vm498_vm2, %v995_v31, 0.0 }
 0x133   :  { %v999_v56 = vpop.eup %998  ;;  %v794_v61 = vsel %vm498_vm2, %v997_v2, 0.0 }
 0x134   :  { %v773_v3 = vadd.f32 %v772_v21, %v771_v1  ;;  %v1001_v48 = vpop.eup %1000  ;;  %v796_v57 = vsel %vm498_vm2, %v999_v56, 0.0 }
 0x135   :  { %v798_v55 = vsel %vm498_vm2, %v1001_v48, 0.0 }
 0x136   :  { %v775_v10 = vadd.f32 %v774_v15, %v773_v3  ;;  %v1003_v63 = vpop.eup %1002 }
 0x137   :  { %v1005_v42 = vpop.eup %1004  ;;  %v800_v44 = vsel %vm498_vm2, %v1003_v63, 0.0 }
 0x138   :  { %v777_v16 = vadd.f32 %v776_v30, %v775_v10  ;;  %v1007_v51 = vpop.eup %1006  ;;  %v802_v22 = vsel %vm498_vm2, %v1005_v42, 0.0 }
 0x139   :  { %v1009_v3 = vpop.eup %1008  ;;  %v804_v15 = vsel %vm498_vm2, %v1007_v51, 0.0 }
 0x13a   :  { %v779_v60 = vadd.f32 %v778_v24, %v777_v16  ;;  %v1011_v8 = vpop.eup %1010  ;;  %v806_v36 = vsel %vm498_vm2, %v1009_v3, 0.0 }
 0x13b   :  { %v808_v17 = vsel %vm498_vm2, %v1011_v8, 0.0 }
 0x13c   :  { %v781_v19 = vadd.f32 %v780_v59, %v779_v60  ;;  %v642_v60 = vld [vmem:[#allocation3] sm:$0x1] }
 0x13d   :  { %v1013_v47 = vpop.eup %1012 }
 0x13e   :  { %v783_v28 = vadd.f32 %v782_v62, %v781_v19  ;;  %v810_v53 = vsel %vm498_vm2, %v1013_v47, 0.0  ;;  %v1015_v7 = vpop.eup %1014  ;;  %v824_v62 = vld [vmem:[#allocation2] sm:$0x1]  ;;  %vm831_vm2 = vcmp.ne.s32.totalorder %v1119_v23, 4294967196 }
 0x13f   :  { %v646_v25 = vmul.f32 %v1015_v7, %v642_v60 }
 0x140   :  { %v785_v39 = vadd.f32 %v784_v43, %v783_v28  ;;  %v829_v28 = vld [vmem:[#allocation4] sm:$0x1] }
 0x142   :  { %v787_v4 = vadd.f32 %v786_v46, %v785_v39 }
 0x144   :  { %v789_v52 = vadd.f32 %v788_v41, %v787_v4 }
 0x146   :  { %v791_v26 = vadd.f32 %v790_v54, %v789_v52 }
 0x148   :  { %v793_v14 = vadd.f32 %v792_v58, %v791_v26 }
 0x14a   :  { %v795_v20 = vadd.f32 %v794_v61, %v793_v14 }
 0x14c   :  { %v797_v13 = vadd.f32 %v796_v57, %v795_v20 }
 0x14e   :  { %v799_v1 = vadd.f32 %v798_v55, %v797_v13 }
 0x150   :  { %v801_v21 = vadd.f32 %v800_v44, %v799_v1 }
 0x152   :  { %v803_v6 = vadd.f32 %v802_v22, %v801_v21 }
 0x154   :  { %v805_v10 = vadd.f32 %v804_v15, %v803_v6 }
 0x156   :  { %v807_v30 = vadd.f32 %v806_v36, %v805_v10 }
 0x158   :  { %v809_v16 = vadd.f32 %v808_v17, %v807_v30 }
 0x15a   :  { %v811_v5 = vadd.f32 %v810_v53, %v809_v16 }
 0x15c   :  { %v812_v24 = vrot.slane %v811_v5, 4 }
 0x15e   :  { %v813_v40 = vadd.f32 %v812_v24, %v811_v5 }
 0x160   :  { %v814_v11 = vrot.slane %v813_v40, 2 }
 0x162   :  { %v815_v34 = vadd.f32 %v814_v11, %v813_v40 }
 0x164   :  { %v816_v35 = vrot.slane %v815_v34, 1 }
 0x166   :  { %v817_v59 = vadd.f32 %v816_v35, %v815_v34 }
 0x168   :  { %v818_v18 = vadd.f32 %v817_v59, %v646_v25 }
 0x16a   :  { %819 = vst.msk [vmem:[#allocation3] sm:$0x1] %vm19_vm1, %v818_v18 }
 0x171   :  { %v825_v19 = vld [vmem:[#allocation3] sm:$0x1] }
 0x172   :  { %1016 = vlog2.f32 %v825_v19 }
 0x17f   :  { %v1017_v32 = vpop.eup %1016 }
 0x180   :  { %v827_v33 = vmul.f32 0.6931472, %v1017_v32 }
 0x182   :  { %v828_v12 = vadd.f32 %v827_v33, %v824_v62 }
 0x184   :  { %v830_v38 = vsub.f32 %v828_v12, %v829_v28 }
 0x186   :  { %v832_v0 = vsel %vm831_vm2, %v830_v38, 0.0 }
 0x187   :  { %833 = vst.msk [vmem:[%s1558_s3] sm:$0x1] %vm19_vm1, %v832_v0 }

</bundles_post_ra>
